<compile_context>
chip_gen: v7x
topology: tpu7x:2x2x1
jax: 0.10.0
libtpu: 0.0.40
codegen_flags: <defaults>
</compile_context>

<pallas_src>
import numpy as np
import jax
import jax.numpy as jnp
from jax.experimental import pallas as pl
from jax.experimental.pallas import tpu as pltpu

# ---------------- module "hyper-parameters" (deterministic, set in-script) -------
GRID_SIZE = 8
BBOX_PER_CELL = 2
NUM_CLASSES = 4
LAMBDA_COORD = 5.0
LAMBDA_NOOBJ = 0.5
D = BBOX_PER_CELL * 5 + NUM_CLASSES          # 14
D_PAD = ((D + 7) // 8) * 8                   # 16: sublane-aligned channel dim


def _round_up(x, m):
    return ((x + m - 1) // m) * m


def yolo_loss_kernel(pred_ref, targ_ref, out_ref):
    """pred_ref / targ_ref: (D_PAD, TILE_N) channel-major tiles (cells on lanes).
    out_ref: (8, 128) per-core-split partial-sum block, resident across the
    reduction axis; every element holds the running total for its split."""
    j = pl.program_id(1)

    @pl.when(j == 0)
    def _():
        out_ref[...] = jnp.zeros_like(out_ref)

    pred = pred_ref[...].astype(jnp.float32)          # (D_PAD, T)
    targ = targ_ref[...].astype(jnp.float32)
    diff = pred - targ
    sq = diff * diff                                  # (D_PAD, T)

    # --- grid-invariant per-channel weight templates, built on a (D_PAD, 1)
    #     sub-vreg (cost negligible vs. the (D_PAD, T) main work) ----------------
    row = jax.lax.broadcasted_iota(jnp.int32, (D_PAD, 1), 0)
    w_any = jnp.where((row >= BBOX_PER_CELL * 5) & (row < D), 1.0, 0.0)  # class rows
    w_obj = []
    w_noobj = []
    for b in range(BBOX_PER_CELL):
        lo = 5 * b
        w_obj.append(jnp.where((row >= lo) & (row < lo + 4), LAMBDA_COORD, 0.0))
        w_noobj.append(jnp.where(row == lo + 4, LAMBDA_NOOBJ, 0.0))
        w_any = w_any + jnp.where(row == lo + 4, 1.0, 0.0)               # conf rows

    # --- data-dependent per-cell factors from the two tconf sublane rows --------
    per_box = []
    any_obj = None
    for b in range(BBOX_PER_CELL):
        tconf = targ[5 * b + 4:5 * b + 5, :]          # (1, T)
        obj_b = (tconf > 0.0).astype(jnp.float32)
        noobj_b = (tconf == 0.0).astype(jnp.float32)
        per_box.append((obj_b, noobj_b))
        any_obj = obj_b if any_obj is None else jnp.maximum(any_obj, obj_b)

    # Fused per-element weight as five rank-1 broadcast terms:
    #   xywh rows of box b : lambda_coord * [tconf_b > 0]
    #   conf row of box b  : [any_obj] + lambda_noobj * [tconf_b == 0]
    #   class rows         : [any_obj]
    weight = w_any * any_obj                          # (D_PAD,1)*(1,T) -> (D_PAD,T)
    for b in range(BBOX_PER_CELL):
        obj_b, noobj_b = per_box[b]
        weight = weight + w_obj[b] * obj_b + w_noobj[b] * noobj_b

    # Per-step weighted-SSE reduce, accumulated into the tiny resident output
    # block (no full-tile scratch RMW; vst traffic per step is just 4 KiB).
    out_ref[...] += jnp.sum(weight * sq)


def _default_core_splits():
    # A 2-way leading split only helps on 2-TensorCore chips (v7x); on 1-TC
    # v5e/v6e it is pure overhead, so default to 1 unless a v7x-like device is seen.
    try:
        kind = jax.devices()[0].device_kind.lower()
    except Exception:
        return 1
    return 2 if ("v7" in kind or "7x" in kind) else 1


def yolo_loss_pallas(predictions, targets, *, max_tile_n=32768, core_splits=None):
    """predictions, targets: (B, S, S, bbox*5 + num_classes) -> scalar f32 loss."""
    if core_splits is None:
        core_splits = _default_core_splits()
    B, S1, S2, Dd = predictions.shape
    assert Dd == D
    N = B * S1 * S2

    # Lane tile: multiple of 128 cells, as large as allowed (2 MiB/block at 32768).
    rows_per_split = -(-N // core_splits)
    tile_n = max(128, min(max_tile_n, _round_up(rows_per_split, 128)))
    steps = -(-rows_per_split // tile_n)
    padded_n = core_splits * steps * tile_n

    # Channel-major, lane-dense layout: (D_PAD sublanes, padded_N lanes).
    # Zero-padded cells / channels contribute exactly 0 (pred == targ == 0).
    pred_t = jnp.pad(predictions.reshape(N, Dd).T,
                     ((0, D_PAD - Dd), (0, padded_n - N)))
    targ_t = jnp.pad(targets.reshape(N, Dd).T,
                     ((0, D_PAD - Dd), (0, padded_n - N)))

    out = pl.pallas_call(
        yolo_loss_kernel,
        out_shape=jax.ShapeDtypeStruct((core_splits * 8, 128), jnp.float32),
        grid_spec=pltpu.PrefetchScalarGridSpec(
            num_scalar_prefetch=0,
            grid=(core_splits, steps),
            in_specs=[
                pl.BlockSpec((D_PAD, tile_n), lambda c, j: (0, c * steps + j)),
                pl.BlockSpec((D_PAD, tile_n), lambda c, j: (0, c * steps + j)),
            ],
            out_specs=pl.BlockSpec((8, 128), lambda c, j: (c, 0)),
        ),
        compiler_params=pltpu.CompilerParams(
            # TODO(synk): on v7x verify the leading axis actually shards across the
            # 2 TensorCores; if not, switch it to pltpu.CORE_PARALLEL.
            dimension_semantics=("parallel", "arbitrary"),
            vmem_limit_bytes=32 * 1024 * 1024,
        ),
    )(pred_t, targ_t)

    # One partial per core split (block is filled uniformly with its total).
    return jnp.sum(out[0::8, 0])


def yolo_loss_ref(pred, targ):
    """Pure-JAX reference mirroring the PyTorch forward semantics."""
    B, S, _, _ = pred.shape
    pb = pred[..., :BBOX_PER_CELL * 5].reshape(B, S, S, BBOX_PER_CELL, 5)
    tb = targ[..., :BBOX_PER_CELL * 5].reshape(B, S, S, BBOX_PER_CELL, 5)
    pc = pred[..., BBOX_PER_CELL * 5:]
    tc = targ[..., BBOX_PER_CELL * 5:]

    cmask = tb[..., 4] > 0                                   # (B,S,S,BB)
    coord = jnp.sum(jnp.where(cmask[..., None],
                              (pb[..., :4] - tb[..., :4]) ** 2, 0.0))
    obj = jnp.any(cmask, axis=-1)                            # (B,S,S)
    csq = (pb[..., 4] - tb[..., 4]) ** 2                     # (B,S,S,BB)
    obj_conf = jnp.sum(jnp.where(obj[..., None], csq, 0.0))
    noobj_conf = jnp.sum(jnp.where(tb[..., 4] == 0, csq, 0.0))
    cls = jnp.sum(jnp.where(obj[..., None], (pc - tc) ** 2, 0.0))
    return LAMBDA_COORD * coord + obj_conf + LAMBDA_NOOBJ * noobj_conf + cls


if __name__ == "__main__":
    key = jax.random.PRNGKey(0)
    k_pred, k_tbox, k_tconf, k_tcls = jax.random.split(key, 4)

    B = 2
    # predictions: raw network output
    predictions = jax.random.normal(
        k_pred, (B, GRID_SIZE, GRID_SIZE, D), dtype=jnp.float32)

    # targets: synthetic labels — per-box xywh in [0,1], conf in {0,1}, one-hot classes
    t_xywh = jax.random.uniform(
        k_tbox, (B, GRID_SIZE, GRID_SIZE, BBOX_PER_CELL, 4), dtype=jnp.float32)
    t_conf = (jax.random.uniform(
        k_tconf, (B, GRID_SIZE, GRID_SIZE, BBOX_PER_CELL, 1)) > 0.6
              ).astype(jnp.float32)
    t_boxes = jnp.concatenate([t_xywh, t_conf], axis=-1).reshape(
        B, GRID_SIZE, GRID_SIZE, BBOX_PER_CELL * 5)
    cls_idx = jax.random.randint(
        k_tcls, (B, GRID_SIZE, GRID_SIZE), 0, NUM_CLASSES)
    t_classes = jax.nn.one_hot(cls_idx, NUM_CLASSES, dtype=jnp.float32)
    targets = jnp.concatenate([t_boxes, t_classes], axis=-1)

    loss = jax.jit(yolo_loss_pallas)(predictions, targets)
    loss = jax.block_until_ready(loss)

    ref = yolo_loss_ref(predictions, targets)
    assert jnp.allclose(loss, ref, rtol=1e-5, atol=1e-3), (loss, ref)

    print("KERNEL_OK")
</pallas_src>

<mosaic_0001>
module attributes {stable_mosaic.version = 11 : i64} {
  func.func @yolo_loss_kernel(%arg0: i32, %arg1: i32, %arg2: memref<16x128xf32, #tpu.memory_space<vmem>>, %arg3: memref<16x128xf32, #tpu.memory_space<vmem>>, %arg4: memref<8x128xf32, #tpu.memory_space<vmem>>) attributes {dimension_semantics = [#tpu.dimension_semantics<parallel>, #tpu.dimension_semantics<arbitrary>], iteration_bounds = array<i64: 1, 1>, scalar_prefetch = 0 : i64, scratch_operands = 0 : i64, tpu.core_type = #tpu.core_type<tc>, window_params = [{transform_indices = @transform_0, window_bounds = array<i64: 16, 128>}, {transform_indices = @transform_1, window_bounds = array<i64: 16, 128>}, {transform_indices = @transform_2, window_bounds = array<i64: 8, 128>}]} {
    %c0_i32 = arith.constant 0 : i32
    %0 = arith.cmpi eq, %arg1, %c0_i32 : i32
    %1 = arith.extui %0 : i1 to i32
    %c0_i32_0 = arith.constant 0 : i32
    %2 = arith.cmpi ne, %1, %c0_i32_0 : i32
    scf.if %2 {
      %cst_31 = arith.constant 0.000000e+00 : f32
      %101 = vector.broadcast %cst_31 : f32 to vector<8x128xf32>
      %c0_32 = arith.constant 0 : index
      %c0_33 = arith.constant 0 : index
      %102 = vector.load %arg4[%c0_32, %c0_33] : memref<8x128xf32, #tpu.memory_space<vmem>>, vector<8x128xf32>
      tpu.vector_store %arg4[%c0_32, %c0_33], %101 {strides = array<i32>} : memref<8x128xf32, #tpu.memory_space<vmem>>, vector<8x128xf32>,
    } else {
    }
    %c0 = arith.constant 0 : index
    %c0_1 = arith.constant 0 : index
    %3 = vector.load %arg2[%c0, %c0_1] : memref<16x128xf32, #tpu.memory_space<vmem>>, vector<16x128xf32>
    %c0_2 = arith.constant 0 : index
    %c0_3 = arith.constant 0 : index
    %4 = vector.load %arg3[%c0_2, %c0_3] : memref<16x128xf32, #tpu.memory_space<vmem>>, vector<16x128xf32>
    %5 = arith.subf %3, %4 : vector<16x128xf32>
    %6 = arith.mulf %5, %5 : vector<16x128xf32>
    %7 = tpu.iota {dimensions = array<i32: 0>} : vector<16x1xi32>
    %c10_i32 = arith.constant 10 : i32
    %8 = vector.broadcast %c10_i32 : i32 to vector<16x1xi32>
    %9 = arith.cmpi sge, %7, %8 : vector<16x1xi32>
    %c14_i32 = arith.constant 14 : i32
    %10 = vector.broadcast %c14_i32 : i32 to vector<16x1xi32>
    %11 = arith.cmpi slt, %7, %10 : vector<16x1xi32>
    %12 = arith.andi %9, %11 : vector<16x1xi1>
    %cst = arith.constant 1.000000e+00 : f32
    %cst_4 = arith.constant 0.000000e+00 : f32
    %13 = vector.broadcast %cst : f32 to vector<16x1xf32>
    %14 = vector.broadcast %cst_4 : f32 to vector<16x1xf32>
    %15 = arith.select %12, %13, %14 : vector<16x1xi1>, vector<16x1xf32>
    %c0_i32_5 = arith.constant 0 : i32
    %16 = vector.broadcast %c0_i32_5 : i32 to vector<16x1xi32>
    %17 = arith.cmpi sge, %7, %16 : vector<16x1xi32>
    %c4_i32 = arith.constant 4 : i32
    %18 = vector.broadcast %c4_i32 : i32 to vector<16x1xi32>
    %19 = arith.cmpi slt, %7, %18 : vector<16x1xi32>
    %20 = arith.andi %17, %19 : vector<16x1xi1>
    %cst_6 = arith.constant 5.000000e+00 : f32
    %cst_7 = arith.constant 0.000000e+00 : f32
    %21 = vector.broadcast %cst_6 : f32 to vector<16x1xf32>
    %22 = vector.broadcast %cst_7 : f32 to vector<16x1xf32>
    %23 = arith.select %20, %21, %22 : vector<16x1xi1>, vector<16x1xf32>
    %c4_i32_8 = arith.constant 4 : i32
    %24 = vector.broadcast %c4_i32_8 : i32 to vector<16x1xi32>
    %25 = arith.cmpi eq, %7, %24 : vector<16x1xi32>
    %cst_9 = arith.constant 5.000000e-01 : f32
    %cst_10 = arith.constant 0.000000e+00 : f32
    %26 = vector.broadcast %cst_9 : f32 to vector<16x1xf32>
    %27 = vector.broadcast %cst_10 : f32 to vector<16x1xf32>
    %28 = arith.select %25, %26, %27 : vector<16x1xi1>, vector<16x1xf32>
    %c4_i32_11 = arith.constant 4 : i32
    %29 = vector.broadcast %c4_i32_11 : i32 to vector<16x1xi32>
    %30 = arith.cmpi eq, %7, %29 : vector<16x1xi32>
    %cst_12 = arith.constant 1.000000e+00 : f32
    %cst_13 = arith.constant 0.000000e+00 : f32
    %31 = vector.broadcast %cst_12 : f32 to vector<16x1xf32>
    %32 = vector.broadcast %cst_13 : f32 to vector<16x1xf32>
    %33 = arith.select %30, %31, %32 : vector<16x1xi1>, vector<16x1xf32>
    %34 = arith.addf %15, %33 : vector<16x1xf32>
    %c5_i32 = arith.constant 5 : i32
    %35 = vector.broadcast %c5_i32 : i32 to vector<16x1xi32>
    %36 = arith.cmpi sge, %7, %35 : vector<16x1xi32>
    %c9_i32 = arith.constant 9 : i32
    %37 = vector.broadcast %c9_i32 : i32 to vector<16x1xi32>
    %38 = arith.cmpi slt, %7, %37 : vector<16x1xi32>
    %39 = arith.andi %36, %38 : vector<16x1xi1>
    %cst_14 = arith.constant 5.000000e+00 : f32
    %cst_15 = arith.constant 0.000000e+00 : f32
    %40 = vector.broadcast %cst_14 : f32 to vector<16x1xf32>
    %41 = vector.broadcast %cst_15 : f32 to vector<16x1xf32>
    %42 = arith.select %39, %40, %41 : vector<16x1xi1>, vector<16x1xf32>
    %c9_i32_16 = arith.constant 9 : i32
    %43 = vector.broadcast %c9_i32_16 : i32 to vector<16x1xi32>
    %44 = arith.cmpi eq, %7, %43 : vector<16x1xi32>
    %cst_17 = arith.constant 5.000000e-01 : f32
    %cst_18 = arith.constant 0.000000e+00 : f32
    %45 = vector.broadcast %cst_17 : f32 to vector<16x1xf32>
    %46 = vector.broadcast %cst_18 : f32 to vector<16x1xf32>
    %47 = arith.select %44, %45, %46 : vector<16x1xi1>, vector<16x1xf32>
    %c9_i32_19 = arith.constant 9 : i32
    %48 = vector.broadcast %c9_i32_19 : i32 to vector<16x1xi32>
    %49 = arith.cmpi eq, %7, %48 : vector<16x1xi32>
    %cst_20 = arith.constant 1.000000e+00 : f32
    %cst_21 = arith.constant 0.000000e+00 : f32
    %50 = vector.broadcast %cst_20 : f32 to vector<16x1xf32>
    %51 = vector.broadcast %cst_21 : f32 to vector<16x1xf32>
    %52 = arith.select %49, %50, %51 : vector<16x1xi1>, vector<16x1xf32>
    %53 = arith.addf %34, %52 : vector<16x1xf32>
    %54 = vector.extract_strided_slice %4 {offsets = [4, 0], sizes = [1, 128], strides = [1, 1]} : vector<16x128xf32> to vector<1x128xf32>
    %cst_22 = arith.constant 0.000000e+00 : f32
    %55 = vector.broadcast %cst_22 : f32 to vector<1x128xf32>
    %56 = arith.cmpf ogt, %54, %55 : vector<1x128xf32>
    %57 = arith.extui %56 : vector<1x128xi1> to vector<1x128xi32>
    %58 = arith.sitofp %57 : vector<1x128xi32> to vector<1x128xf32>
    %cst_23 = arith.constant 0.000000e+00 : f32
    %59 = vector.broadcast %cst_23 : f32 to vector<1x128xf32>
    %60 = arith.cmpf oeq, %54, %59 : vector<1x128xf32>
    %61 = arith.extui %60 : vector<1x128xi1> to vector<1x128xi32>
    %62 = arith.sitofp %61 : vector<1x128xi32> to vector<1x128xf32>
    %63 = vector.extract_strided_slice %4 {offsets = [9, 0], sizes = [1, 128], strides = [1, 1]} : vector<16x128xf32> to vector<1x128xf32>
    %cst_24 = arith.constant 0.000000e+00 : f32
    %64 = vector.broadcast %cst_24 : f32 to vector<1x128xf32>
    %65 = arith.cmpf ogt, %63, %64 : vector<1x128xf32>
    %66 = arith.extui %65 : vector<1x128xi1> to vector<1x128xi32>
    %67 = arith.sitofp %66 : vector<1x128xi32> to vector<1x128xf32>
    %cst_25 = arith.constant 0.000000e+00 : f32
    %68 = vector.broadcast %cst_25 : f32 to vector<1x128xf32>
    %69 = arith.cmpf oeq, %63, %68 : vector<1x128xf32>
    %70 = arith.extui %69 : vector<1x128xi1> to vector<1x128xi32>
    %71 = arith.sitofp %70 : vector<1x128xi32> to vector<1x128xf32>
    %72 = arith.maximumf %58, %67 : vector<1x128xf32>
    %73 = vector.broadcast %53 : vector<16x1xf32> to vector<16x128xf32>
    %74 = vector.broadcast %72 : vector<1x128xf32> to vector<16x128xf32>
    %75 = arith.mulf %73, %74 : vector<16x128xf32>
    %76 = vector.broadcast %23 : vector<16x1xf32> to vector<16x128xf32>
    %77 = vector.broadcast %58 : vector<1x128xf32> to vector<16x128xf32>
    %78 = arith.mulf %76, %77 : vector<16x128xf32>
    %79 = arith.addf %75, %78 : vector<16x128xf32>
    %80 = vector.broadcast %28 : vector<16x1xf32> to vector<16x128xf32>
    %81 = vector.broadcast %62 : vector<1x128xf32> to vector<16x128xf32>
    %82 = arith.mulf %80, %81 : vector<16x128xf32>
    %83 = arith.addf %79, %82 : vector<16x128xf32>
    %84 = vector.broadcast %42 : vector<16x1xf32> to vector<16x128xf32>
    %85 = vector.broadcast %67 : vector<1x128xf32> to vector<16x128xf32>
    %86 = arith.mulf %84, %85 : vector<16x128xf32>
    %87 = arith.addf %83, %86 : vector<16x128xf32>
    %88 = vector.broadcast %47 : vector<16x1xf32> to vector<16x128xf32>
    %89 = vector.broadcast %71 : vector<1x128xf32> to vector<16x128xf32>
    %90 = arith.mulf %88, %89 : vector<16x128xf32>
    %91 = arith.addf %87, %90 : vector<16x128xf32>
    %c0_26 = arith.constant 0 : index
    %c0_27 = arith.constant 0 : index
    %92 = vector.load %arg4[%c0_26, %c0_27] : memref<8x128xf32, #tpu.memory_space<vmem>>, vector<8x128xf32>
    %93 = arith.mulf %91, %6 : vector<16x128xf32>
    %94 = vector.shape_cast %93 : vector<16x128xf32> to vector<1x16x128xf32>
    %cst_28 = arith.constant dense<0.000000e+00> : vector<1xf32>
    %95 = vector.multi_reduction <add>, %94, %cst_28 [1, 2] : vector<1x16x128xf32> to vector<1xf32>
    %96 = vector.shape_cast %95 : vector<1xf32> to vector<1x1x1xf32>
    %97 = vector.extract %96[0, 0, 0] : f32 from vector<1x1x1xf32>
    %98 = vector.broadcast %97 : f32 to vector<8x128xf32>
    %99 = arith.addf %92, %98 : vector<8x128xf32>
    %c0_29 = arith.constant 0 : index
    %c0_30 = arith.constant 0 : index
    %100 = vector.load %arg4[%c0_29, %c0_30] : memref<8x128xf32, #tpu.memory_space<vmem>>, vector<8x128xf32>
    tpu.vector_store %arg4[%c0_29, %c0_30], %99 {strides = array<i32>} : memref<8x128xf32, #tpu.memory_space<vmem>>, vector<8x128xf32>,
    return
  }
  func.func @transform_0(%arg0: i32, %arg1: i32) -> (i32, i32) {
    %c1_i32 = arith.constant 1 : i32
    %0 = arith.muli %arg0, %c1_i32 : i32
    %1 = arith.addi %0, %arg1 : i32
    %c0_i32 = arith.constant 0 : i32
    %c0_i32_0 = arith.constant 0 : i32
    return %c0_i32, %1 : i32, i32
  }
  func.func @transform_1(%arg0: i32, %arg1: i32) -> (i32, i32) {
    %c1_i32 = arith.constant 1 : i32
    %0 = arith.muli %arg0, %c1_i32 : i32
    %1 = arith.addi %0, %arg1 : i32
    %c0_i32 = arith.constant 0 : i32
    %c0_i32_0 = arith.constant 0 : i32
    return %c0_i32, %1 : i32, i32
  }
  func.func @transform_2(%arg0: i32, %arg1: i32) -> (i32, i32) {
    %c0_i32 = arith.constant 0 : i32
    %c0_i32_0 = arith.constant 0 : i32
    return %arg0, %c0_i32 : i32, i32
  }
}

</mosaic_0001>

<bundles_post_ra>
// kernel: yolo_loss_pallas.1
= control target key start
LH: loop header
LB: loop body
LE: loop exit
PB: predicated region body
PF: predicated region fallthrough
CT: control target
= control target key end

     0   :  { %v58_v0 = vlaneseq  ;;  %v194_v5 = vmov 0.0   ;;  %s229_s1 = inlined_call_operand.vmem [shape: f32[16,128], index: 1, kind: input, shape index: {}]   ;;  %s230_s0 = inlined_call_operand.vmem [shape: f32[16,128], index: 0, kind: input, shape index: {}]   ;;  %s231_s2 = inlined_call_operand.vmem [shape: f32[8,128], index: 2, kind: output, shape index: {}]  }
   0x1   :  { %v52_v1 = vld [vmem:[%s229_s1] sm:$0xff]  ;;  %v53_v2 = vld [vmem:[%s229_s1 + $0x8] sm:$0xff] }
   0x2   :  { %v59_v3 = vshrl.u32 %v58_v0, 7  ;;  %vm101_vm0 = vcmp.gt.f32.partialorder %v52_v1, 0.0  ;;  %vm107_vm1 = vcmp.gt.f32.partialorder %v53_v2, 0.0  ;;  %vm104_vm2 = vcmp.eq.f32.partialorder %v52_v1, 0.0  ;;  %v50_v22 = vld [vmem:[%s230_s0] sm:$0xff]  ;;  %v51_v23 = vld [vmem:[%s230_s0 + $0x8] sm:$0xff] }
   0x3   :  { %v187_v6 = vsel %vm101_vm0, 1.0, %v194_v5  ;;  %v189_v7 = vsel %vm107_vm1, 1.0, %v194_v5  ;;  %v188_v10 = vsel %vm104_vm2, 1.0, %v194_v5  ;;  %vm110_vm8 = vcmp.eq.f32.partialorder %v53_v2, 0.0 }
   0x4   :  { %v60_v4 = vadd.s32 8, %v59_v3  ;;  %vm71_vm5 = vcmp.lt.s32.totalorder %v59_v3, 4  ;;  %vm77_vm9 = vcmp.eq.s32.totalorder %v59_v3, 4  ;;  %v114_v12 = vrot.slane %v189_v7, 5 }
   0x5   :  { %v75_v11 = vsel %vm71_vm5, 5.0, %v194_v5  ;;  %v119_v13 = vsub.s32 4, %v59_v3  ;;  %vm85_vm10 = vcmp.ge.s32.totalorder %v59_v3, 5  ;;  %v141_v15 = vsub.s32 1, %v59_v3 }
   0x6   :  { %vm62_vm3 = vcmp.ge.s32.totalorder %v60_v4, 10  ;;  %vm64_vm4 = vcmp.lt.s32.totalorder %v60_v4, 14  ;;  %vm94_vm7 = vcmp.eq.s32.totalorder %v60_v4, 9  ;;  %vm88_vm11 = vcmp.lt.s32.totalorder %v60_v4, 9 }
   0x7   :  { %vm66_vm6 = vmand %vm62_vm3, %vm64_vm4  ;;  %v98_v9 = vsel %vm94_vm7, 1.0, %v194_v5  ;;  %v190_v16 = vsel %vm110_vm8, 1.0, %v194_v5  ;;  %v116_v17 = vmax.f32 %v187_v6, %v114_v12  ;;  %v126_v18 = vrot.slane %v187_v6, %v119_v13 }
   0x8   :  { %v68_v8 = vsel %vm66_vm6, 1.0, %v194_v5  ;;  %v134_v19 = vrot.slane %v188_v10, %v119_v13  ;;  %v79_v20 = vsel %vm77_vm9, 0.5, %v194_v5  ;;  %v81_v21 = vsel %vm77_vm9, 1.0, %v194_v5 }
   0x9   :  { %v100_v14 = vadd.f32 %v98_v9, %v68_v8  ;;  %v120_v24 = vrot.slane %v116_v17, %v119_v13  ;;  %v127_v25 = vmul.f32 %v126_v18, %v75_v11  ;;  %v128_v26 = vmul.f32 0.0, %v126_v18 }
   0xa   :  { %v142_v27 = vrot.slane %v189_v7, %v141_v15  ;;  %v91_v28 = vsel %vm85_vm10, 5.0, %v194_v5  ;;  %v92_v29 = vsel %vm88_vm11, 5.0, %v194_v5  ;;  %v150_v30 = vrot.slane %v190_v16, %v141_v15 }
   0xb   :  { %v121_v31 = vmul.f32 %v120_v24, %v81_v21  ;;  %v122_v32 = vmul.f32 %v120_v24, %v100_v14  ;;  %v135_v33 = vmul.f32 %v134_v19, %v79_v20  ;;  %v136_v34 = vmul.f32 0.0, %v134_v19 }
   0xc   :  { %v54_v35 = vsub.f32 %v50_v22, %v52_v1  ;;  %v55_v36 = vsub.f32 %v51_v23, %v53_v2  ;;  %v96_v37 = vsel %vm94_vm7, 0.5, %v194_v5  ;;  %v143_v40 = vmul.f32 %v142_v27, %v91_v28 }
   0xd   :  { %v129_v38 = vadd.f32 %v127_v25, %v121_v31  ;;  %v130_v39 = vadd.f32 %v128_v26, %v122_v32  ;;  %v144_v41 = vmul.f32 %v142_v27, %v92_v29  ;;  %v151_v44 = vmul.f32 0.0, %v150_v30 }
   0xe   :  { %v152_v45 = vmul.f32 %v150_v30, %v96_v37  ;;  %v56_v46 = vmul.f32 %v54_v35, %v54_v35  ;;  %v57_v47 = vmul.f32 %v55_v36, %v55_v36 }
   0xf   :  { %v137_v42 = vadd.f32 %v135_v33, %v129_v38  ;;  %v138_v43 = vadd.f32 %v136_v34, %v130_v39 }
  0x11   :  { %v145_v48 = vadd.f32 %v143_v40, %v137_v42  ;;  %v146_v49 = vadd.f32 %v144_v41, %v138_v43 }
  0x13   :  { %v153_v50 = vadd.f32 %v151_v44, %v145_v48  ;;  %v154_v51 = vadd.f32 %v152_v45, %v146_v49 }
  0x15   :  { %v156_v52 = vmul.f32 %v153_v50, %v56_v46  ;;  %v157_v53 = vmul.f32 %v154_v51, %v57_v47 }
  0x17   :  { %v158_v54 = vadd.f32 %v157_v53, %v156_v52 }
  0x19   :  { %159 = vadd.xlane.f32.xlu0 %v158_v54 }
  0xa6   :  { %v160_v55 = vpop.xlane.xlu0 %159 }
  0xa7   :  { %v161_v56 = vrot.slane %v160_v55, 4 }
  0xa9   :  { %v162_v57 = vadd.f32 %v161_v56, %v160_v55 }
  0xab   :  { %v163_v58 = vrot.slane %v162_v57, 2 }
  0xad   :  { %v164_v59 = vadd.f32 %v163_v58, %v162_v57 }
  0xaf   :  { %v165_v60 = vrot.slane %v164_v59, 1 }
  0xb1   :  { %v166_v61 = vadd.f32 %v165_v60, %v164_v59 }
  0xb3   :  { %191 = vpush %v166_v61 }
  0xe4   :  { %s192_s0 = spop %191 }
  0xe5   :  { %v168_v62 = vstv %s192_s0 }
  0xe6   :  { %170 = vst [vmem:[%s231_s2] sm:$0xff] %v168_v62 }

</bundles_post_ra>
